<compile_context>
chip_gen: v7x
topology: tpu7x:2x2x1
jax: 0.10.0
libtpu: 0.0.40
codegen_flags: <defaults>
</compile_context>

<pallas_src>
import functools

import jax
import jax.numpy as jnp
from jax.experimental import pallas as pl
from jax.experimental.pallas import tpu as pltpu

NEG_SLOPE = 0.01   # F.leaky_relu default
C = 4              # conv0 / conv1 are Conv2d(4, 4, 1)

# Packed-parameter layout (weights row-major over (c_out, c_in)).
_W0_OFF = 0
_B0_OFF = _W0_OFF + C * C
_W1_OFF = _B0_OFF + C
_B1_OFF = _W1_OFF + C * C
_P_LEN = _B1_OFF + C          # 40 floats total


def _lrelu(v):
    return jnp.where(v >= 0, v, NEG_SLOPE * v)


def testnet_kernel(x_ref, p_ref, o_ref):
    """Fused conv0 -> lrelu -> conv1 -> lrelu on a lane-dense (C, P) slab.

    x_ref : (C, P) f32 in VMEM   (P = N*H*W = 128 -> full-lane rows)
    p_ref : (40,)  f32 in SMEM   packed [w0 | b0 | w1 | b1]
    o_ref : (C, P) f32 in VMEM
    """
    x = x_ref[...]                                        # (C, P), one load
    xrows = [x[ci:ci + 1, :] for ci in range(C)]          # C x (1, P) views

    # ---- conv0 (1x1) + leaky_relu: unrolled VPU scalar*vreg FMAs, no MXU ---
    y0 = []
    for co in range(C):
        s = xrows[0] * p_ref[_W0_OFF + co * C + 0]
        for ci in range(1, C):
            s = s + xrows[ci] * p_ref[_W0_OFF + co * C + ci]
        y0.append(_lrelu(s + p_ref[_B0_OFF + co]))        # (1, P)

    # ---- conv1 (1x1) + leaky_relu, assembled into one full-lane store ------
    rows = []
    for co in range(C):
        s = y0[0] * p_ref[_W1_OFF + co * C + 0]
        for ci in range(1, C):
            s = s + y0[ci] * p_ref[_W1_OFF + co * C + ci]
        rows.append(_lrelu(s + p_ref[_B1_OFF + co]))      # (1, P)

    o_ref[...] = jnp.concatenate(rows, axis=0)            # single (C, P) store


def _pallas_forward(x_slab, params, *, n, h, w):
    """Per-call path: pallas_call on the lane-dense slab, then back to NCHW."""
    c, p = x_slab.shape
    out = pl.pallas_call(
        testnet_kernel,
        out_shape=jax.ShapeDtypeStruct((c, p), jnp.float32),
        in_specs=[
            pl.BlockSpec(memory_space=pltpu.MemorySpace.VMEM),
            pl.BlockSpec(memory_space=pltpu.MemorySpace.SMEM),
        ],
        out_specs=pl.BlockSpec(memory_space=pltpu.MemorySpace.VMEM),
        cost_estimate=pl.CostEstimate(
            flops=2 * (2 * C * C * p),        # two 1x1 convs over p pixels
            transcendentals=0,
            bytes_accessed=(2 * c * p + _P_LEN) * 4,
        ),
    )(x_slab, params)
    # (C, N*H*W) -> NCHW: tiny (512-float) transpose back, inside the jit.
    return jnp.transpose(out.reshape(c, n, h, w), (1, 0, 2, 3))


def make_testnet_forward(xf_nchw, w0, b0, w1, b1):
    """One-time setup (mirrors module construction): pre-layout xf + pack params.

    Returns forward(x) matching testNet.forward: the argument x is ignored.
    """
    n, cc, h, w = xf_nchw.shape
    assert cc == C

    # NCHW -> lane-dense (C, N*H*W): done ONCE, not per forward call.
    x_slab = (
        jnp.transpose(xf_nchw, (1, 0, 2, 3)).reshape(C, n * h * w)
        .astype(jnp.float32)
    )

    # Single packed parameter operand (lives in SMEM inside the kernel),
    # packed ONCE here instead of per call.
    params = jnp.concatenate(
        [w0.reshape(-1), b0.reshape(-1), w1.reshape(-1), b1.reshape(-1)]
    ).astype(jnp.float32)
    assert params.shape == (_P_LEN,)

    call = jax.jit(functools.partial(_pallas_forward, n=n, h=h, w=w))

    def forward(x_unused):
        del x_unused  # the PyTorch module ignores its input
        # NOTE(perf): the result is a constant of (xf, params); a serving path
        # would cache call(x_slab, params) once.  Kernel kept per spec.
        return call(x_slab, params)

    return forward


if __name__ == "__main__":
    key = jax.random.PRNGKey(0)
    k_xf, k_w0, k_b0, k_w1, k_b1, k_x = jax.random.split(key, 6)

    N, H, W = 2, 8, 8

    # Module-global input: torch.randint(0, 256, [2,4,8,8]).float()
    xf = jax.random.randint(k_xf, (N, C, H, W), 0, 256).astype(jnp.float32)

    # Deterministic 1x1 conv params (Conv2d(4,4,1): weight (4,4,1,1) -> (4,4)),
    # mimicking PyTorch's uniform(-1/sqrt(fan_in), 1/sqrt(fan_in)) init.
    bound = 1.0 / jnp.sqrt(float(C))
    w0 = jax.random.uniform(k_w0, (C, C), jnp.float32, -bound, bound)
    b0 = jax.random.uniform(k_b0, (C,), jnp.float32, -bound, bound)
    w1 = jax.random.uniform(k_w1, (C, C), jnp.float32, -bound, bound)
    b1 = jax.random.uniform(k_b1, (C,), jnp.float32, -bound, bound)

    forward = make_testnet_forward(xf, w0, b0, w1, b1)

    # forward(x): x is ignored by the original module (it uses the global xf).
    x_ignored = jax.random.normal(k_x, (N, C, H, W), jnp.float32)
    out = jax.block_until_ready(forward(x_ignored))

    # Pure-JAX reference (a 1x1 conv == per-pixel channel matmul).
    def ref(xf_):
        x_pc = jnp.transpose(xf_, (0, 2, 3, 1)).reshape(-1, C)
        y = _lrelu(x_pc @ w0.T + b0)
        y = _lrelu(y @ w1.T + b1)
        return jnp.transpose(y.reshape(N, H, W, C), (0, 3, 1, 2))

    assert out.shape == (N, C, H, W)
    assert jnp.allclose(out, ref(xf), atol=1e-4, rtol=1e-4)
    print("KERNEL_OK")
</pallas_src>

<mosaic_0001>
module attributes {stable_mosaic.version = 11 : i64} {
  func.func @testnet_kernel(%arg0: memref<4x128xf32, #tpu.memory_space<vmem>>, %arg1: memref<40xf32, #tpu.memory_space<smem>>, %arg2: memref<4x128xf32, #tpu.memory_space<vmem>>) attributes {dimension_semantics = [], scalar_prefetch = 0 : i64, scratch_operands = 0 : i64, tpu.core_type = #tpu.core_type<tc>} {
    %c0 = arith.constant 0 : index
    %c0_0 = arith.constant 0 : index
    %0 = vector.load %arg0[%c0, %c0_0] : memref<4x128xf32, #tpu.memory_space<vmem>>, vector<4x128xf32>
    %1 = vector.extract_strided_slice %0 {offsets = [0, 0], sizes = [1, 128], strides = [1, 1]} : vector<4x128xf32> to vector<1x128xf32>
    %2 = vector.extract_strided_slice %0 {offsets = [1, 0], sizes = [1, 128], strides = [1, 1]} : vector<4x128xf32> to vector<1x128xf32>
    %3 = vector.extract_strided_slice %0 {offsets = [2, 0], sizes = [1, 128], strides = [1, 1]} : vector<4x128xf32> to vector<1x128xf32>
    %4 = vector.extract_strided_slice %0 {offsets = [3, 0], sizes = [1, 128], strides = [1, 1]} : vector<4x128xf32> to vector<1x128xf32>
    %c0_1 = arith.constant 0 : index
    %5 = memref.load %arg1[%c0_1] : memref<40xf32, #tpu.memory_space<smem>>
    %6 = vector.broadcast %5 : f32 to vector<1x128xf32>
    %7 = arith.mulf %1, %6 : vector<1x128xf32>
    %c1 = arith.constant 1 : index
    %8 = memref.load %arg1[%c1] : memref<40xf32, #tpu.memory_space<smem>>
    %9 = vector.broadcast %8 : f32 to vector<1x128xf32>
    %10 = arith.mulf %2, %9 : vector<1x128xf32>
    %11 = arith.addf %7, %10 : vector<1x128xf32>
    %c2 = arith.constant 2 : index
    %12 = memref.load %arg1[%c2] : memref<40xf32, #tpu.memory_space<smem>>
    %13 = vector.broadcast %12 : f32 to vector<1x128xf32>
    %14 = arith.mulf %3, %13 : vector<1x128xf32>
    %15 = arith.addf %11, %14 : vector<1x128xf32>
    %c3 = arith.constant 3 : index
    %16 = memref.load %arg1[%c3] : memref<40xf32, #tpu.memory_space<smem>>
    %17 = vector.broadcast %16 : f32 to vector<1x128xf32>
    %18 = arith.mulf %4, %17 : vector<1x128xf32>
    %19 = arith.addf %15, %18 : vector<1x128xf32>
    %c16 = arith.constant 16 : index
    %20 = memref.load %arg1[%c16] : memref<40xf32, #tpu.memory_space<smem>>
    %21 = vector.broadcast %20 : f32 to vector<1x128xf32>
    %22 = arith.addf %19, %21 : vector<1x128xf32>
    %cst = arith.constant 0.000000e+00 : f32
    %23 = vector.broadcast %cst : f32 to vector<1x128xf32>
    %24 = arith.cmpf oge, %22, %23 : vector<1x128xf32>
    %cst_2 = arith.constant 0.00999999977 : f32
    %25 = vector.broadcast %cst_2 : f32 to vector<1x128xf32>
    %26 = arith.mulf %25, %22 : vector<1x128xf32>
    %27 = arith.select %24, %22, %26 : vector<1x128xi1>, vector<1x128xf32>
    %c4 = arith.constant 4 : index
    %28 = memref.load %arg1[%c4] : memref<40xf32, #tpu.memory_space<smem>>
    %29 = vector.broadcast %28 : f32 to vector<1x128xf32>
    %30 = arith.mulf %1, %29 : vector<1x128xf32>
    %c5 = arith.constant 5 : index
    %31 = memref.load %arg1[%c5] : memref<40xf32, #tpu.memory_space<smem>>
    %32 = vector.broadcast %31 : f32 to vector<1x128xf32>
    %33 = arith.mulf %2, %32 : vector<1x128xf32>
    %34 = arith.addf %30, %33 : vector<1x128xf32>
    %c6 = arith.constant 6 : index
    %35 = memref.load %arg1[%c6] : memref<40xf32, #tpu.memory_space<smem>>
    %36 = vector.broadcast %35 : f32 to vector<1x128xf32>
    %37 = arith.mulf %3, %36 : vector<1x128xf32>
    %38 = arith.addf %34, %37 : vector<1x128xf32>
    %c7 = arith.constant 7 : index
    %39 = memref.load %arg1[%c7] : memref<40xf32, #tpu.memory_space<smem>>
    %40 = vector.broadcast %39 : f32 to vector<1x128xf32>
    %41 = arith.mulf %4, %40 : vector<1x128xf32>
    %42 = arith.addf %38, %41 : vector<1x128xf32>
    %c17 = arith.constant 17 : index
    %43 = memref.load %arg1[%c17] : memref<40xf32, #tpu.memory_space<smem>>
    %44 = vector.broadcast %43 : f32 to vector<1x128xf32>
    %45 = arith.addf %42, %44 : vector<1x128xf32>
    %cst_3 = arith.constant 0.000000e+00 : f32
    %46 = vector.broadcast %cst_3 : f32 to vector<1x128xf32>
    %47 = arith.cmpf oge, %45, %46 : vector<1x128xf32>
    %cst_4 = arith.constant 0.00999999977 : f32
    %48 = vector.broadcast %cst_4 : f32 to vector<1x128xf32>
    %49 = arith.mulf %48, %45 : vector<1x128xf32>
    %50 = arith.select %47, %45, %49 : vector<1x128xi1>, vector<1x128xf32>
    %c8 = arith.constant 8 : index
    %51 = memref.load %arg1[%c8] : memref<40xf32, #tpu.memory_space<smem>>
    %52 = vector.broadcast %51 : f32 to vector<1x128xf32>
    %53 = arith.mulf %1, %52 : vector<1x128xf32>
    %c9 = arith.constant 9 : index
    %54 = memref.load %arg1[%c9] : memref<40xf32, #tpu.memory_space<smem>>
    %55 = vector.broadcast %54 : f32 to vector<1x128xf32>
    %56 = arith.mulf %2, %55 : vector<1x128xf32>
    %57 = arith.addf %53, %56 : vector<1x128xf32>
    %c10 = arith.constant 10 : index
    %58 = memref.load %arg1[%c10] : memref<40xf32, #tpu.memory_space<smem>>
    %59 = vector.broadcast %58 : f32 to vector<1x128xf32>
    %60 = arith.mulf %3, %59 : vector<1x128xf32>
    %61 = arith.addf %57, %60 : vector<1x128xf32>
    %c11 = arith.constant 11 : index
    %62 = memref.load %arg1[%c11] : memref<40xf32, #tpu.memory_space<smem>>
    %63 = vector.broadcast %62 : f32 to vector<1x128xf32>
    %64 = arith.mulf %4, %63 : vector<1x128xf32>
    %65 = arith.addf %61, %64 : vector<1x128xf32>
    %c18 = arith.constant 18 : index
    %66 = memref.load %arg1[%c18] : memref<40xf32, #tpu.memory_space<smem>>
    %67 = vector.broadcast %66 : f32 to vector<1x128xf32>
    %68 = arith.addf %65, %67 : vector<1x128xf32>
    %cst_5 = arith.constant 0.000000e+00 : f32
    %69 = vector.broadcast %cst_5 : f32 to vector<1x128xf32>
    %70 = arith.cmpf oge, %68, %69 : vector<1x128xf32>
    %cst_6 = arith.constant 0.00999999977 : f32
    %71 = vector.broadcast %cst_6 : f32 to vector<1x128xf32>
    %72 = arith.mulf %71, %68 : vector<1x128xf32>
    %73 = arith.select %70, %68, %72 : vector<1x128xi1>, vector<1x128xf32>
    %c12 = arith.constant 12 : index
    %74 = memref.load %arg1[%c12] : memref<40xf32, #tpu.memory_space<smem>>
    %75 = vector.broadcast %74 : f32 to vector<1x128xf32>
    %76 = arith.mulf %1, %75 : vector<1x128xf32>
    %c13 = arith.constant 13 : index
    %77 = memref.load %arg1[%c13] : memref<40xf32, #tpu.memory_space<smem>>
    %78 = vector.broadcast %77 : f32 to vector<1x128xf32>
    %79 = arith.mulf %2, %78 : vector<1x128xf32>
    %80 = arith.addf %76, %79 : vector<1x128xf32>
    %c14 = arith.constant 14 : index
    %81 = memref.load %arg1[%c14] : memref<40xf32, #tpu.memory_space<smem>>
    %82 = vector.broadcast %81 : f32 to vector<1x128xf32>
    %83 = arith.mulf %3, %82 : vector<1x128xf32>
    %84 = arith.addf %80, %83 : vector<1x128xf32>
    %c15 = arith.constant 15 : index
    %85 = memref.load %arg1[%c15] : memref<40xf32, #tpu.memory_space<smem>>
    %86 = vector.broadcast %85 : f32 to vector<1x128xf32>
    %87 = arith.mulf %4, %86 : vector<1x128xf32>
    %88 = arith.addf %84, %87 : vector<1x128xf32>
    %c19 = arith.constant 19 : index
    %89 = memref.load %arg1[%c19] : memref<40xf32, #tpu.memory_space<smem>>
    %90 = vector.broadcast %89 : f32 to vector<1x128xf32>
    %91 = arith.addf %88, %90 : vector<1x128xf32>
    %cst_7 = arith.constant 0.000000e+00 : f32
    %92 = vector.broadcast %cst_7 : f32 to vector<1x128xf32>
    %93 = arith.cmpf oge, %91, %92 : vector<1x128xf32>
    %cst_8 = arith.constant 0.00999999977 : f32
    %94 = vector.broadcast %cst_8 : f32 to vector<1x128xf32>
    %95 = arith.mulf %94, %91 : vector<1x128xf32>
    %96 = arith.select %93, %91, %95 : vector<1x128xi1>, vector<1x128xf32>
    %c20 = arith.constant 20 : index
    %97 = memref.load %arg1[%c20] : memref<40xf32, #tpu.memory_space<smem>>
    %98 = vector.broadcast %97 : f32 to vector<1x128xf32>
    %99 = arith.mulf %27, %98 : vector<1x128xf32>
    %c21 = arith.constant 21 : index
    %100 = memref.load %arg1[%c21] : memref<40xf32, #tpu.memory_space<smem>>
    %101 = vector.broadcast %100 : f32 to vector<1x128xf32>
    %102 = arith.mulf %50, %101 : vector<1x128xf32>
    %103 = arith.addf %99, %102 : vector<1x128xf32>
    %c22 = arith.constant 22 : index
    %104 = memref.load %arg1[%c22] : memref<40xf32, #tpu.memory_space<smem>>
    %105 = vector.broadcast %104 : f32 to vector<1x128xf32>
    %106 = arith.mulf %73, %105 : vector<1x128xf32>
    %107 = arith.addf %103, %106 : vector<1x128xf32>
    %c23 = arith.constant 23 : index
    %108 = memref.load %arg1[%c23] : memref<40xf32, #tpu.memory_space<smem>>
    %109 = vector.broadcast %108 : f32 to vector<1x128xf32>
    %110 = arith.mulf %96, %109 : vector<1x128xf32>
    %111 = arith.addf %107, %110 : vector<1x128xf32>
    %c36 = arith.constant 36 : index
    %112 = memref.load %arg1[%c36] : memref<40xf32, #tpu.memory_space<smem>>
    %113 = vector.broadcast %112 : f32 to vector<1x128xf32>
    %114 = arith.addf %111, %113 : vector<1x128xf32>
    %cst_9 = arith.constant 0.000000e+00 : f32
    %115 = vector.broadcast %cst_9 : f32 to vector<1x128xf32>
    %116 = arith.cmpf oge, %114, %115 : vector<1x128xf32>
    %cst_10 = arith.constant 0.00999999977 : f32
    %117 = vector.broadcast %cst_10 : f32 to vector<1x128xf32>
    %118 = arith.mulf %117, %114 : vector<1x128xf32>
    %119 = arith.select %116, %114, %118 : vector<1x128xi1>, vector<1x128xf32>
    %c24 = arith.constant 24 : index
    %120 = memref.load %arg1[%c24] : memref<40xf32, #tpu.memory_space<smem>>
    %121 = vector.broadcast %120 : f32 to vector<1x128xf32>
    %122 = arith.mulf %27, %121 : vector<1x128xf32>
    %c25 = arith.constant 25 : index
    %123 = memref.load %arg1[%c25] : memref<40xf32, #tpu.memory_space<smem>>
    %124 = vector.broadcast %123 : f32 to vector<1x128xf32>
    %125 = arith.mulf %50, %124 : vector<1x128xf32>
    %126 = arith.addf %122, %125 : vector<1x128xf32>
    %c26 = arith.constant 26 : index
    %127 = memref.load %arg1[%c26] : memref<40xf32, #tpu.memory_space<smem>>
    %128 = vector.broadcast %127 : f32 to vector<1x128xf32>
    %129 = arith.mulf %73, %128 : vector<1x128xf32>
    %130 = arith.addf %126, %129 : vector<1x128xf32>
    %c27 = arith.constant 27 : index
    %131 = memref.load %arg1[%c27] : memref<40xf32, #tpu.memory_space<smem>>
    %132 = vector.broadcast %131 : f32 to vector<1x128xf32>
    %133 = arith.mulf %96, %132 : vector<1x128xf32>
    %134 = arith.addf %130, %133 : vector<1x128xf32>
    %c37 = arith.constant 37 : index
    %135 = memref.load %arg1[%c37] : memref<40xf32, #tpu.memory_space<smem>>
    %136 = vector.broadcast %135 : f32 to vector<1x128xf32>
    %137 = arith.addf %134, %136 : vector<1x128xf32>
    %cst_11 = arith.constant 0.000000e+00 : f32
    %138 = vector.broadcast %cst_11 : f32 to vector<1x128xf32>
    %139 = arith.cmpf oge, %137, %138 : vector<1x128xf32>
    %cst_12 = arith.constant 0.00999999977 : f32
    %140 = vector.broadcast %cst_12 : f32 to vector<1x128xf32>
    %141 = arith.mulf %140, %137 : vector<1x128xf32>
    %142 = arith.select %139, %137, %141 : vector<1x128xi1>, vector<1x128xf32>
    %c28 = arith.constant 28 : index
    %143 = memref.load %arg1[%c28] : memref<40xf32, #tpu.memory_space<smem>>
    %144 = vector.broadcast %143 : f32 to vector<1x128xf32>
    %145 = arith.mulf %27, %144 : vector<1x128xf32>
    %c29 = arith.constant 29 : index
    %146 = memref.load %arg1[%c29] : memref<40xf32, #tpu.memory_space<smem>>
    %147 = vector.broadcast %146 : f32 to vector<1x128xf32>
    %148 = arith.mulf %50, %147 : vector<1x128xf32>
    %149 = arith.addf %145, %148 : vector<1x128xf32>
    %c30 = arith.constant 30 : index
    %150 = memref.load %arg1[%c30] : memref<40xf32, #tpu.memory_space<smem>>
    %151 = vector.broadcast %150 : f32 to vector<1x128xf32>
    %152 = arith.mulf %73, %151 : vector<1x128xf32>
    %153 = arith.addf %149, %152 : vector<1x128xf32>
    %c31 = arith.constant 31 : index
    %154 = memref.load %arg1[%c31] : memref<40xf32, #tpu.memory_space<smem>>
    %155 = vector.broadcast %154 : f32 to vector<1x128xf32>
    %156 = arith.mulf %96, %155 : vector<1x128xf32>
    %157 = arith.addf %153, %156 : vector<1x128xf32>
    %c38 = arith.constant 38 : index
    %158 = memref.load %arg1[%c38] : memref<40xf32, #tpu.memory_space<smem>>
    %159 = vector.broadcast %158 : f32 to vector<1x128xf32>
    %160 = arith.addf %157, %159 : vector<1x128xf32>
    %cst_13 = arith.constant 0.000000e+00 : f32
    %161 = vector.broadcast %cst_13 : f32 to vector<1x128xf32>
    %162 = arith.cmpf oge, %160, %161 : vector<1x128xf32>
    %cst_14 = arith.constant 0.00999999977 : f32
    %163 = vector.broadcast %cst_14 : f32 to vector<1x128xf32>
    %164 = arith.mulf %163, %160 : vector<1x128xf32>
    %165 = arith.select %162, %160, %164 : vector<1x128xi1>, vector<1x128xf32>
    %c32 = arith.constant 32 : index
    %166 = memref.load %arg1[%c32] : memref<40xf32, #tpu.memory_space<smem>>
    %167 = vector.broadcast %166 : f32 to vector<1x128xf32>
    %168 = arith.mulf %27, %167 : vector<1x128xf32>
    %c33 = arith.constant 33 : index
    %169 = memref.load %arg1[%c33] : memref<40xf32, #tpu.memory_space<smem>>
    %170 = vector.broadcast %169 : f32 to vector<1x128xf32>
    %171 = arith.mulf %50, %170 : vector<1x128xf32>
    %172 = arith.addf %168, %171 : vector<1x128xf32>
    %c34 = arith.constant 34 : index
    %173 = memref.load %arg1[%c34] : memref<40xf32, #tpu.memory_space<smem>>
    %174 = vector.broadcast %173 : f32 to vector<1x128xf32>
    %175 = arith.mulf %73, %174 : vector<1x128xf32>
    %176 = arith.addf %172, %175 : vector<1x128xf32>
    %c35 = arith.constant 35 : index
    %177 = memref.load %arg1[%c35] : memref<40xf32, #tpu.memory_space<smem>>
    %178 = vector.broadcast %177 : f32 to vector<1x128xf32>
    %179 = arith.mulf %96, %178 : vector<1x128xf32>
    %180 = arith.addf %176, %179 : vector<1x128xf32>
    %c39 = arith.constant 39 : index
    %181 = memref.load %arg1[%c39] : memref<40xf32, #tpu.memory_space<smem>>
    %182 = vector.broadcast %181 : f32 to vector<1x128xf32>
    %183 = arith.addf %180, %182 : vector<1x128xf32>
    %cst_15 = arith.constant 0.000000e+00 : f32
    %184 = vector.broadcast %cst_15 : f32 to vector<1x128xf32>
    %185 = arith.cmpf oge, %183, %184 : vector<1x128xf32>
    %cst_16 = arith.constant 0.00999999977 : f32
    %186 = vector.broadcast %cst_16 : f32 to vector<1x128xf32>
    %187 = arith.mulf %186, %183 : vector<1x128xf32>
    %188 = arith.select %185, %183, %187 : vector<1x128xi1>, vector<1x128xf32>
    %189 = tpu.concatenate %119, %142, %165, %188 in 0 : vector<1x128xf32>, vector<1x128xf32>, vector<1x128xf32>, vector<1x128xf32> -> vector<4x128xf32>
    %c0_17 = arith.constant 0 : index
    %c0_18 = arith.constant 0 : index
    %190 = vector.load %arg2[%c0_17, %c0_18] : memref<4x128xf32, #tpu.memory_space<vmem>>, vector<4x128xf32>
    tpu.vector_store %arg2[%c0_17, %c0_18], %189 {strides = array<i32>} : memref<4x128xf32, #tpu.memory_space<vmem>>, vector<4x128xf32>,
    return
  }
}

</mosaic_0001>

<bundles_post_ra>
// kernel: _pallas_forward.1
= control target key start
LH: loop header
LB: loop body
LE: loop exit
PB: predicated region body
PF: predicated region fallthrough
CT: control target
= control target key end

     0   :  { %7 = vsyncpa [#allocation3], 0  ;;  %s491_s0 = inlined_call_operand.hbm [shape: f32[4,128], index: 0, kind: input, shape index: {}]   ;;  %s492_s1 = inlined_call_operand.vmem [shape: f32[40], index: 1, kind: input, shape index: {}]   ;;  %s493_s2 = inlined_call_operand.vmem [shape: f32[4,128], index: 2, kind: output, shape index: {}]  }
   0x1   :  { %8 = vsyncpa [#allocation4], 0  ;;  %s25_s11 = sshll.u32 %s492_s1, 4  ;;  %s342_s12 = smov [#allocation2]   ;;  %s26_s11 = int_to_ptr.vmem [resolvable:$true] %s25_s11 }
   0x2   :  { %s15_s13 = sshll.u32 %s342_s12, 4  ;;  %s304_s16 = scalar_lea.hbm %s491_s0, 64  ;;  %s16_s13 = int_to_ptr.vmem [resolvable:$true] %s15_s13 }
   0x3   :  { %p305_p0 = scmp.ne.s32.totalorder %s491_s0, %s304_s16  ;;  %p308_p1 = scmp.lt.u32.totalorder %s304_s16, %s491_s0 }
   0x5   :  { %p310_p2 = pnand %p308_p1, %p305_p0 }
   0x7   :  { %313 = shalt.err (!%p310_p2)
}
   0x8   :  { %s314_s21 = scalar_lea.vmem %s16_s13, 64  ;;  %p319_p4 = scmp.lt.s32.totalorder %s16_s13, %s16_s13 }
   0x9   :  { %p315_p3 = scmp.ne.s32.totalorder %s16_s13, %s314_s21  ;;  %p320_p5 = scmp.lt.s32.totalorder %s314_s21, %s314_s21 }
   0xb   :  { %p321_p6 = por %p320_p5, %p319_p4 }
   0xd   :  { %p322_p7 = pnand %p321_p6, %p315_p3 }
   0xf   :  { %325 = shalt.err (!%p322_p7)
}
  0x10   :  { %18 = dma.hbm_to_vmem [thread:$0]  %s491_s0, 64, %s16_s13, [#allocation3]  }
  0x11   :  { %s326_s23 = scalar_lea.vmem %s26_s11, 16  ;;  %p331_p9 = scmp.lt.s32.totalorder %s26_s11, %s26_s11 }
  0x12   :  { %p327_p8 = scmp.ne.s32.totalorder %s26_s11, %s326_s23  ;;  %p332_p10 = scmp.lt.s32.totalorder %s326_s23, %s326_s23 }
  0x14   :  { %p333_p11 = por %p332_p10, %p331_p9 }
  0x16   :  { %p334_p12 = pnand %p333_p11, %p327_p8 }
  0x18   :  { %337 = shalt.err (!%p334_p12)
}
  0x19   :  { %s343_s24 = smov [#allocation5]  }
  0x1a   :  { %28 = dma.vmem_to_smem %s26_s11, 16, %s343_s24, [#allocation4]  }
  0x1b   :  { %338 = dma.done.wait [#allocation3], 64  }
  0x1c   :  { %339 = vsyncadd [#allocation3], 4294967232 }
  0x1d   :  { %340 = dma.done.wait [#allocation4], 16  }
  0x1e   :  { %341 = vsyncadd [#allocation4], 4294967280 }
  0x1f   :  { %35 = sfence }
  0x20   :  { %s37_s25 = sld [smem:[#allocation5]]  ;;  %s263_s26 = sld [smem:[#allocation5 + $0x1]]  ;;  %v376_v0 = vld [vmem:[#allocation2] sm:$0xf]  ;;  %vm250_vm7 = vcmask 1040384   ;;  %vm252_vm8 = vcmask 1041408  }
  0x21   :  { %s264_s27 = sld [smem:[#allocation5 + $0x2]]  ;;  %s265_s28 = sld [smem:[#allocation5 + $0x3]]  ;;  %vm254_vm10 = vcmask 1042432  }
  0x22   :  { %s374_s29 = sld [smem:[#allocation5 + $0x10]]  ;;  %s267_s0 = sld [smem:[#allocation5 + $0x4]] }
  0x23   :  { %s268_s30 = sld [smem:[#allocation5 + $0x5]]  ;;  %s269_s3 = sld [smem:[#allocation5 + $0x6]] }
  0x24   :  { %s378_s4 = sld [smem:[#allocation5 + $0x7]]  ;;  %s380_s5 = sld [smem:[#allocation5 + $0x8]] }
  0x25   :  { %s382_s6 = sld [smem:[#allocation5 + $0x9]]  ;;  %s384_s7 = sld [smem:[#allocation5 + $0xa]] }
  0x26   :  { %v38_v1 = vstv %s37_s25  ;;  %v41_v2 = vstv %s263_s26  ;;  %s386_s8 = sld [smem:[#allocation5 + $0xb]]  ;;  %s390_s9 = sld [smem:[#allocation5 + $0x11]] }
  0x27   :  { %v39_v3 = vmul.f32 %v38_v1, %v376_v0  ;;  %v42_v4 = vmul.f32 %v41_v2, %v376_v0  ;;  %v48_v5 = vstv %s264_s27  ;;  %v55_v6 = vstv %s265_s28  ;;  %s392_s10 = sld [smem:[#allocation5 + $0xc]]  ;;  %s397_s11 = sld [smem:[#allocation5 + $0xd]] }
  0x28   :  { %v49_v7 = vmul.f32 %v48_v5, %v376_v0  ;;  %v56_v8 = vmul.f32 %v55_v6, %v376_v0  ;;  %v68_v9 = vstv %s267_s0  ;;  %v62_v11 = vstv %s374_s29  ;;  %s399_s12 = sld [smem:[#allocation5 + $0xe]]  ;;  %s406_s13 = sld [smem:[#allocation5 + $0x12]] }
  0x29   :  { %v44_v10 = vrot.slane %v42_v4, 1  ;;  %v71_v12 = vstv %s268_s30  ;;  %v78_v13 = vstv %s269_s3  ;;  %v69_v15 = vmul.f32 %v68_v9, %v376_v0  ;;  %s408_s14 = sld [smem:[#allocation5 + $0xf]]  ;;  %s415_s15 = sld [smem:[#allocation5 + $0x14]] }
  0x2a   :  { %v51_v14 = vrot.slane %v49_v7, 2  ;;  %v72_v16 = vmul.f32 %v71_v12, %v376_v0  ;;  %v79_v17 = vmul.f32 %v78_v13, %v376_v0  ;;  %v58_v19 = vrot.slane %v56_v8, 3  ;;  %s417_s16 = sld [smem:[#allocation5 + $0x15]]  ;;  %s424_s17 = sld [smem:[#allocation5 + $0x13]] }
  0x2b   :  { %v46_v18 = vadd.f32 %v44_v10, %v39_v3  ;;  %v85_v20 = vstv %s378_s4  ;;  %v98_v21 = vstv %s380_s5  ;;  %v101_v27 = vstv %s382_s6  ;;  %s426_s18 = sld [smem:[#allocation5 + $0x16]]  ;;  %s429_s19 = sld [smem:[#allocation5 + $0x17]] }
  0x2c   :  { %v74_v22 = vrot.slane %v72_v16, 1  ;;  %v81_v23 = vrot.slane %v79_v17, 2  ;;  %v86_v24 = vmul.f32 %v85_v20, %v376_v0  ;;  %v99_v25 = vmul.f32 %v98_v21, %v376_v0  ;;  %s431_s20 = sld [smem:[#allocation5 + $0x18]]  ;;  %s435_s21 = sld [smem:[#allocation5 + $0x19]] }
  0x2d   :  { %v53_v26 = vadd.f32 %v51_v14, %v46_v18  ;;  %v108_v28 = vstv %s384_s7  ;;  %v115_v29 = vstv %s386_s8  ;;  %v102_v32 = vmul.f32 %v101_v27, %v376_v0  ;;  %s437_s1 = sld [smem:[#allocation5 + $0x1a]]  ;;  %s441_s22 = sld [smem:[#allocation5 + $0x24]] }
  0x2e   :  { %v76_v30 = vadd.f32 %v74_v22, %v69_v15  ;;  %v88_v31 = vrot.slane %v86_v24, 3  ;;  %v109_v33 = vmul.f32 %v108_v28, %v376_v0  ;;  %v92_v35 = vstv %s390_s9  ;;  %s445_s23 = sld [smem:[#allocation5 + $0x1b]]  ;;  %s447_s24 = sld [smem:[#allocation5 + $0x1c]] }
  0x2f   :  { %v60_v34 = vadd.f32 %v58_v19, %v53_v26  ;;  %v116_v36 = vmul.f32 %v115_v29, %v376_v0  ;;  %v128_v37 = vstv %s392_s10  ;;  %v104_v39 = vrot.slane %v102_v32, 1  ;;  %s449_s25 = sld [smem:[#allocation5 + $0x1d]]  ;;  %s454_s26 = sld [smem:[#allocation5 + $0x1e]] }
  0x30   :  { %v83_v38 = vadd.f32 %v81_v23, %v76_v30  ;;  %v111_v40 = vrot.slane %v109_v33, 2  ;;  %v129_v41 = vmul.f32 %v128_v37, %v376_v0  ;;  %v131_v44 = vstv %s397_s11  ;;  %s458_s27 = sld [smem:[#allocation5 + $0x1f]]  ;;  %s461_s28 = sld [smem:[#allocation5 + $0x25]] }
  0x31   :  { %v63_v42 = vadd.f32 %v62_v11, %v60_v34  ;;  %v118_v43 = vrot.slane %v116_v36, 3  ;;  %v138_v45 = vstv %s399_s12  ;;  %v106_v47 = vadd.f32 %v104_v39, %v99_v25  ;;  %s463_s29 = sld [smem:[#allocation5 + $0x20]]  ;;  %s468_s0 = sld [smem:[#allocation5 + $0x26]] }
  0x32   :  { %v90_v46 = vadd.f32 %v88_v31, %v83_v38  ;;  %v132_v48 = vmul.f32 %v131_v44, %v376_v0  ;;  %v139_v49 = vmul.f32 %v138_v45, %v376_v0  ;;  %v122_v51 = vstv %s406_s13  ;;  %s470_s30 = sld [smem:[#allocation5 + $0x21]]  ;;  %s472_s3 = sld [smem:[#allocation5 + $0x22]] }
  0x33   :  { %vm64_vm0 = vcmp.ge.f32.partialorder %v63_v42, 0.0  ;;  %v65_v50 = vmul.f32 0.01, %v63_v42  ;;  %v145_v52 = vstv %s408_s14  ;;  %v113_v54 = vadd.f32 %v111_v40, %v106_v47  ;;  %s476_s4 = sld [smem:[#allocation5 + $0x23]]  ;;  %s301_s5 = sld [smem:[#allocation5 + $0x27]] }
  0x34   :  { %v93_v53 = vadd.f32 %v92_v35, %v90_v46  ;;  %v134_v55 = vrot.slane %v132_v48, 1  ;;  %v141_v56 = vrot.slane %v139_v49, 2  ;;  %v146_v58 = vmul.f32 %v145_v52, %v376_v0 }
  0x35   :  { %v66_v57 = vsel %vm64_vm0, %v63_v42, %v65_v50  ;;  %v158_v59 = vstv %s415_s15  ;;  %v161_v60 = vstv %s417_s16  ;;  %v120_v62 = vadd.f32 %v118_v43, %v113_v54 }
  0x36   :  { %vm94_vm1 = vcmp.ge.f32.partialorder %v93_v53, 0.0  ;;  %v95_v61 = vmul.f32 0.01, %v93_v53  ;;  %v136_v63 = vadd.f32 %v134_v55, %v129_v41  ;;  %v148_v1 = vrot.slane %v146_v58, 3 }
  0x37   :  { %v152_v2 = vstv %s424_s17  ;;  %v159_v3 = vmul.f32 %v158_v59, %v66_v57  ;;  %v165_v4 = vstv %s426_s18  ;;  %v123_v0 = vadd.f32 %v122_v51, %v120_v62 }
  0x38   :  { %v96_v5 = vsel %vm94_vm1, %v93_v53, %v95_v61  ;;  %v143_v6 = vadd.f32 %v141_v56, %v136_v63  ;;  %v169_v7 = vstv %s429_s19  ;;  %v179_v9 = vstv %s431_s20 }
  0x39   :  { %v162_v8 = vmul.f32 %v161_v60, %v96_v5  ;;  %v182_v10 = vstv %s435_s21  ;;  %v186_v11 = vstv %s437_s1  ;;  %vm124_vm2 = vcmp.ge.f32.partialorder %v123_v0, 0.0 }
  0x3a   :  { %v125_v12 = vmul.f32 0.01, %v123_v0  ;;  %v150_v13 = vadd.f32 %v148_v1, %v143_v6  ;;  %v180_v14 = vmul.f32 %v179_v9, %v66_v57  ;;  %v173_v16 = vstv %s441_s22 }
  0x3b   :  { %v163_v15 = vadd.f32 %v162_v8, %v159_v3  ;;  %v183_v17 = vmul.f32 %v182_v10, %v96_v5  ;;  %v190_v18 = vstv %s445_s23  ;;  %v200_v21 = vstv %s447_s24 }
  0x3c   :  { %v126_v19 = vsel %vm124_vm2, %v123_v0, %v125_v12  ;;  %v153_v20 = vadd.f32 %v152_v2, %v150_v13  ;;  %v203_v22 = vstv %s449_s25  ;;  %v201_v26 = vmul.f32 %v200_v21, %v66_v57 }
  0x3d   :  { %v166_v23 = vmul.f32 %v165_v4, %v126_v19  ;;  %v184_v24 = vadd.f32 %v183_v17, %v180_v14  ;;  %v187_v25 = vmul.f32 %v186_v11, %v126_v19  ;;  %v204_v28 = vmul.f32 %v203_v22, %v96_v5 }
  0x3e   :  { %vm154_vm3 = vcmp.ge.f32.partialorder %v153_v20, 0.0  ;;  %v155_v27 = vmul.f32 0.01, %v153_v20  ;;  %v207_v29 = vstv %s454_s26  ;;  %v211_v33 = vstv %s458_s27 }
  0x3f   :  { %v167_v30 = vadd.f32 %v166_v23, %v163_v15  ;;  %v188_v31 = vadd.f32 %v187_v25, %v184_v24  ;;  %v208_v32 = vmul.f32 %v207_v29, %v126_v19  ;;  %v194_v35 = vstv %s461_s28 }
  0x40   :  { %v156_v34 = vsel %vm154_vm3, %v153_v20, %v155_v27  ;;  %v205_v36 = vadd.f32 %v204_v28, %v201_v26  ;;  %v221_v37 = vstv %s463_s29  ;;  %v215_v43 = vstv %s468_s0 }
  0x41   :  { %v170_v38 = vmul.f32 %v169_v7, %v156_v34  ;;  %v191_v39 = vmul.f32 %v190_v18, %v156_v34  ;;  %v212_v40 = vmul.f32 %v211_v33, %v156_v34  ;;  %v222_v41 = vmul.f32 %v221_v37, %v66_v57 }
  0x42   :  { %v209_v42 = vadd.f32 %v208_v32, %v205_v36  ;;  %v224_v44 = vstv %s470_s30  ;;  %v228_v45 = vstv %s472_s3  ;;  %v232_v49 = vstv %s476_s4 }
  0x43   :  { %v171_v46 = vadd.f32 %v170_v38, %v167_v30  ;;  %v192_v47 = vadd.f32 %v191_v39, %v188_v31  ;;  %v225_v48 = vmul.f32 %v224_v44, %v96_v5  ;;  %v229_v51 = vmul.f32 %v228_v45, %v126_v19 }
  0x44   :  { %v213_v50 = vadd.f32 %v212_v40, %v209_v42  ;;  %v233_v56 = vmul.f32 %v232_v49, %v156_v34  ;;  %v236_v62 = vstv %s301_s5 }
  0x45   :  { %v174_v52 = vadd.f32 %v173_v16, %v171_v46  ;;  %v195_v53 = vadd.f32 %v194_v35, %v192_v47  ;;  %v226_v54 = vadd.f32 %v225_v48, %v222_v41 }
  0x46   :  { %v216_v55 = vadd.f32 %v215_v43, %v213_v50 }
  0x47   :  { %vm175_vm4 = vcmp.ge.f32.partialorder %v174_v52, 0.0  ;;  %v176_v58 = vmul.f32 0.01, %v174_v52  ;;  %vm196_vm5 = vcmp.ge.f32.partialorder %v195_v53, 0.0  ;;  %v197_v57 = vmul.f32 0.01, %v195_v53 }
  0x48   :  { %vm217_vm6 = vcmp.ge.f32.partialorder %v216_v55, 0.0  ;;  %v218_v59 = vmul.f32 0.01, %v216_v55  ;;  %v230_v60 = vadd.f32 %v229_v51, %v226_v54 }
  0x49   :  { %v198_v61 = vsel %vm196_vm5, %v195_v53, %v197_v57  ;;  %v177_v63 = vsel %vm175_vm4, %v174_v52, %v176_v58 }
  0x4a   :  { %v219_v1 = vsel %vm217_vm6, %v216_v55, %v218_v59  ;;  %v234_v2 = vadd.f32 %v233_v56, %v230_v60  ;;  %v242_v3 = vrot.slane %v198_v61, 7 }
  0x4b   :  { %v245_v5 = vrot.slane %v219_v1, 6 }
  0x4c   :  { %v237_v4 = vadd.f32 %v236_v62, %v234_v2  ;;  %v251_v0 = vsel %vm250_vm7, %v177_v63, %v242_v3 }
  0x4d   :  { %v253_v8 = vsel %vm252_vm8, %v251_v0, %v245_v5 }
  0x4e   :  { %vm238_vm9 = vcmp.ge.f32.partialorder %v237_v4, 0.0  ;;  %v239_v6 = vmul.f32 0.01, %v237_v4 }
  0x50   :  { %v240_v7 = vsel %vm238_vm9, %v237_v4, %v239_v6 }
  0x51   :  { %v248_v9 = vrot.slane %v240_v7, 5 }
  0x53   :  { %v255_v10 = vsel %vm254_vm10, %v253_v8, %v248_v9 }
  0x54   :  { %256 = vst [vmem:[%s493_s2] sm:$0xf] %v255_v10 }
  0x55   :  { %261 = vsyncpa [#allocation3], 1 }
  0x56   :  { %262 = vsyncpa [#allocation4], 1 }

</bundles_post_ra>
